<compile_context>
chip_gen: v5e
topology: v5e:2x2
jax: 0.10.0
libtpu: 0.0.40
codegen_flags: <defaults>
</compile_context>

<pallas_src>
import jax
import jax.numpy as jnp
from jax.experimental import pallas as pl
from jax.experimental.pallas import tpu as pltpu


def _round_up(x, m):
    return ((x + m - 1) // m) * m


def make_mlp_kernel(in_dim, rows1, p_h, *, use_bf16=False):
    """in_dim: real input width. rows1: sublane-aligned row of layer-1 bias.
    p_h: padded hidden lane width (multiple of 128)."""
    cdt = jnp.bfloat16 if use_bf16 else jnp.float32

    def mm(a, w):
        return jnp.dot(a.astype(cdt), w.astype(cdt),
                       preferred_element_type=jnp.float32)

    def mlp_kernel(x_ref, s1_ref, sh_ref, s4_ref, o_ref):
        # ---- layer 1: (tile_b, in_dim) @ (in_dim, P_h) + b1, tanh ----------
        h = mm(x_ref[...], s1_ref[0:in_dim, :]) + s1_ref[rows1:rows1 + 1, :]
        h = jnp.tanh(h)

        # ---- layer 2: (P_h, P_h), tanh --------------------------------------
        h = jnp.tanh(mm(h, sh_ref[0, 0:p_h, :]) + sh_ref[0, p_h:p_h + 1, :])

        # ---- layer 3: (P_h, P_h), sigmoid as a single EUP tanh push ---------
        z = mm(h, sh_ref[1, 0:p_h, :]) + sh_ref[1, p_h:p_h + 1, :]
        h = 0.5 * (jnp.tanh(0.5 * z) + 1.0)

        # ---- output layer: (P_h, P_out), lane-dense store --------------------
        o = mm(h, s4_ref[0:p_h, :]) + s4_ref[p_h:p_h + 1, :]
        o_ref[...] = o.astype(o_ref.dtype)

    return mlp_kernel


def neural_network_forward(x, params, *, max_tile_b=2048, use_bf16=False):
    """x: [B, input_dim] f32. params: w1..w4 as (in, out), b1..b4 as (out,).
    Returns [B, output_dim] f32."""
    ws = [params[f"w{i}"] for i in range(1, 5)]
    bs = [params[f"b{i}"] for i in range(1, 5)]
    B, in_dim = x.shape
    h1d, h2d, h3d = ws[0].shape[1], ws[1].shape[1], ws[2].shape[1]
    out_dim = ws[3].shape[1]

    # Per-tensor padded lane widths (do NOT inherit the widest dim globally).
    P_h = _round_up(max(h1d, h2d, h3d), 128)     # hidden lane width
    P_out = _round_up(out_dim, 128)              # output lane width
    ROWS1 = _round_up(in_dim, 8)                 # sublane-aligned bias row

    # ---- pack params into three grid-invariant slabs ------------------------
    # slab1: W1 in rows [0:in_dim], b1 at row ROWS1.
    slab1 = jnp.zeros((ROWS1 + 8, P_h), jnp.float32)
    slab1 = slab1.at[:in_dim, :h1d].set(ws[0].astype(jnp.float32))
    slab1 = slab1.at[ROWS1, :h1d].set(bs[0].astype(jnp.float32))

    # slab_h: layers 2 and 3 stacked; weight rows [0:P_h], bias at row P_h.
    def hid_slab(w, b):
        fi, fo = w.shape
        s = jnp.zeros((P_h + 8, P_h), jnp.float32)
        s = s.at[:fi, :fo].set(w.astype(jnp.float32))
        s = s.at[P_h, :fo].set(b.astype(jnp.float32))
        return s
    slab_h = jnp.stack([hid_slab(ws[1], bs[1]), hid_slab(ws[2], bs[2])])

    # slab4: W4 rows [0:h3d], b4 at row P_h, P_out lanes.
    fi4, fo4 = ws[3].shape
    slab4 = jnp.zeros((P_h + 8, P_out), jnp.float32)
    slab4 = slab4.at[:fi4, :fo4].set(ws[3].astype(jnp.float32))
    slab4 = slab4.at[P_h, :fo4].set(bs[3].astype(jnp.float32))

    # ---- batch tiling --------------------------------------------------------
    # Large tiles to amortize the ~0.35us per-step overhead, but at least
    # 2 grid steps once per-step work clears the overhead so v7x's second
    # TensorCore gets a share of the "parallel" grid axis.
    B8 = _round_up(B, 8)
    MIN_ROWS_PER_SPLIT_STEP = 512
    if B8 >= 2 * MIN_ROWS_PER_SPLIT_STEP:
        tile_b = min(max_tile_b, _round_up(pl.cdiv(B8, 2), 8))
    else:
        tile_b = B8                      # tiny batch: single grid step
    B_pad = _round_up(B8, tile_b)

    x = x.astype(jnp.float32)
    if B_pad == B:
        x_in = x                         # no wrapper copy at all
    else:
        x_in = jnp.zeros((B_pad, in_dim), jnp.float32).at[:B].set(x)

    grid = (B_pad // tile_b,)

    # ---- right-sized VMEM limit ---------------------------------------------
    bpe = 4
    blk_bytes = tile_b * (in_dim + P_out) * bpe          # x + out blocks
    param_bytes = (slab1.size + slab_h.size + slab4.size) * bpe
    act_bytes = 3 * tile_b * P_h * bpe                    # live activations
    est = 2 * (blk_bytes + param_bytes) + act_bytes       # double-buffered I/O
    vmem_limit = int(min(48 * 1024 * 1024, max(4 * 1024 * 1024, 2 * est)))

    out = pl.pallas_call(
        make_mlp_kernel(in_dim, ROWS1, P_h, use_bf16=use_bf16),
        out_shape=jax.ShapeDtypeStruct((B_pad, P_out), jnp.float32),
        grid_spec=pltpu.PrefetchScalarGridSpec(
            num_scalar_prefetch=0,
            grid=grid,
            in_specs=[
                # x: row-tiled, real (unpadded) feature width.
                pl.BlockSpec((tile_b, in_dim), lambda i: (i, 0)),
                # grid-invariant packed params.
                pl.BlockSpec(slab1.shape, lambda i: (0, 0)),
                pl.BlockSpec(slab_h.shape, lambda i: (0, 0, 0)),
                pl.BlockSpec(slab4.shape, lambda i: (0, 0)),
            ],
            out_specs=pl.BlockSpec((tile_b, P_out), lambda i: (i, 0)),
        ),
        compiler_params=pltpu.CompilerParams(
            dimension_semantics=("parallel",),
            vmem_limit_bytes=vmem_limit,
        ),
    )(x_in, slab1, slab_h, slab4)

    return out[:B, :out_dim]


def init_params(key, input_dim, h1, h2, h3, output_dim):
    """PyTorch-style uniform(+/- 1/sqrt(fan_in)) init.
    Weights stored as (in, out) = transpose of nn.Linear's (out, in)."""
    dims = [(input_dim, h1), (h1, h2), (h2, h3), (h3, output_dim)]
    params = {}
    for idx, (fan_in, fan_out) in enumerate(dims, start=1):
        key, kw, kb = jax.random.split(key, 3)
        bound = 1.0 / jnp.sqrt(fan_in)
        params[f"w{idx}"] = jax.random.uniform(
            kw, (fan_in, fan_out), jnp.float32, minval=-bound, maxval=bound)
        params[f"b{idx}"] = jax.random.uniform(
            kb, (fan_out,), jnp.float32, minval=-bound, maxval=bound)
    return params


def reference_forward(x, p):
    h1 = jnp.tanh(x @ p["w1"] + p["b1"])
    h2 = jnp.tanh(h1 @ p["w2"] + p["b2"])
    h3 = jax.nn.sigmoid(h2 @ p["w3"] + p["b3"])
    return h3 @ p["w4"] + p["b4"]


if __name__ == "__main__":
    key = jax.random.PRNGKey(0)
    batch, input_dim = 16, 32
    h1, h2, h3, output_dim = 64, 64, 32, 8

    key, kx = jax.random.split(key)
    x = jax.random.normal(kx, (batch, input_dim), jnp.float32)
    params = init_params(key, input_dim, h1, h2, h3, output_dim)

    out = neural_network_forward(x, params)
    out = jax.block_until_ready(out)

    ref = reference_forward(x, params)
    assert out.shape == (batch, output_dim)
    assert jnp.allclose(out, ref, atol=1e-4, rtol=1e-4), "mismatch vs reference"

    print("KERNEL_OK")
</pallas_src>

<mosaic_0001>
module attributes {stable_mosaic.version = 11 : i64} {
  func.func @mlp_kernel(%arg0: i32, %arg1: memref<16x32xf32, #tpu.memory_space<vmem>>, %arg2: memref<40x128xf32, #tpu.memory_space<vmem>>, %arg3: memref<2x136x128xf32, #tpu.memory_space<vmem>>, %arg4: memref<136x128xf32, #tpu.memory_space<vmem>>, %arg5: memref<16x128xf32, #tpu.memory_space<vmem>>) attributes {dimension_semantics = [#tpu.dimension_semantics<parallel>], iteration_bounds = array<i64: 1>, scalar_prefetch = 0 : i64, scratch_operands = 0 : i64, tpu.core_type = #tpu.core_type<tc>, window_params = [{transform_indices = @transform_0, window_bounds = array<i64: 16, 32>}, {pipeline_mode = #tpu.pipeline_mode<synchronous>, transform_indices = @transform_1, window_bounds = array<i64: 40, 128>}, {pipeline_mode = #tpu.pipeline_mode<synchronous>, transform_indices = @transform_2, window_bounds = array<i64: 2, 136, 128>}, {pipeline_mode = #tpu.pipeline_mode<synchronous>, transform_indices = @transform_3, window_bounds = array<i64: 136, 128>}, {transform_indices = @transform_4, window_bounds = array<i64: 16, 128>}]} {
    %c0 = arith.constant 0 : index
    %c0_0 = arith.constant 0 : index
    %0 = vector.load %arg1[%c0, %c0_0] : memref<16x32xf32, #tpu.memory_space<vmem>>, vector<16x32xf32>
    %c0_1 = arith.constant 0 : index
    %c0_2 = arith.constant 0 : index
    %1 = vector.load %arg2[%c0_1, %c0_2] : memref<40x128xf32, #tpu.memory_space<vmem>>, vector<32x128xf32>
    %cst = arith.constant dense<0.000000e+00> : vector<16x128xf32>
    %2 = tpu.matmul %0, %1, %cst {dimension_numbers = #tpu.dot_dimension_numbers<[1], [0], [0], [1], [0, 0, 1, 1], [], []>} : vector<16x32xf32>, vector<32x128xf32>, vector<16x128xf32> -> vector<16x128xf32>
    %c32 = arith.constant 32 : index
    %c0_3 = arith.constant 0 : index
    %3 = vector.load %arg2[%c32, %c0_3] : memref<40x128xf32, #tpu.memory_space<vmem>>, vector<1x128xf32>
    %4 = vector.broadcast %3 : vector<1x128xf32> to vector<16x128xf32>
    %5 = arith.addf %2, %4 : vector<16x128xf32>
    %6 = math.tanh %5 : vector<16x128xf32>
    %c0_4 = arith.constant 0 : index
    %c0_5 = arith.constant 0 : index
    %c0_6 = arith.constant 0 : index
    %7 = vector.load %arg3[%c0_4, %c0_5, %c0_6] : memref<2x136x128xf32, #tpu.memory_space<vmem>>, vector<1x128x128xf32>
    %8 = vector.shape_cast %7 : vector<1x128x128xf32> to vector<128x128xf32>
    %cst_7 = arith.constant dense<0.000000e+00> : vector<16x128xf32>
    %9 = tpu.matmul %6, %8, %cst_7 {dimension_numbers = #tpu.dot_dimension_numbers<[1], [0], [0], [1], [0, 0, 1, 1], [], []>} : vector<16x128xf32>, vector<128x128xf32>, vector<16x128xf32> -> vector<16x128xf32>
    %c0_8 = arith.constant 0 : index
    %c128 = arith.constant 128 : index
    %c0_9 = arith.constant 0 : index
    %10 = vector.load %arg3[%c0_8, %c128, %c0_9] : memref<2x136x128xf32, #tpu.memory_space<vmem>>, vector<1x1x128xf32>
    %11 = vector.shape_cast %10 : vector<1x1x128xf32> to vector<1x128xf32>
    %12 = vector.broadcast %11 : vector<1x128xf32> to vector<16x128xf32>
    %13 = arith.addf %9, %12 : vector<16x128xf32>
    %14 = math.tanh %13 : vector<16x128xf32>
    %c1 = arith.constant 1 : index
    %c0_10 = arith.constant 0 : index
    %c0_11 = arith.constant 0 : index
    %15 = vector.load %arg3[%c1, %c0_10, %c0_11] : memref<2x136x128xf32, #tpu.memory_space<vmem>>, vector<1x128x128xf32>
    %16 = vector.shape_cast %15 : vector<1x128x128xf32> to vector<128x128xf32>
    %cst_12 = arith.constant dense<0.000000e+00> : vector<16x128xf32>
    %17 = tpu.matmul %14, %16, %cst_12 {dimension_numbers = #tpu.dot_dimension_numbers<[1], [0], [0], [1], [0, 0, 1, 1], [], []>} : vector<16x128xf32>, vector<128x128xf32>, vector<16x128xf32> -> vector<16x128xf32>
    %c1_13 = arith.constant 1 : index
    %c128_14 = arith.constant 128 : index
    %c0_15 = arith.constant 0 : index
    %18 = vector.load %arg3[%c1_13, %c128_14, %c0_15] : memref<2x136x128xf32, #tpu.memory_space<vmem>>, vector<1x1x128xf32>
    %19 = vector.shape_cast %18 : vector<1x1x128xf32> to vector<1x128xf32>
    %20 = vector.broadcast %19 : vector<1x128xf32> to vector<16x128xf32>
    %21 = arith.addf %17, %20 : vector<16x128xf32>
    %cst_16 = arith.constant 5.000000e-01 : f32
    %22 = vector.broadcast %cst_16 : f32 to vector<16x128xf32>
    %23 = arith.mulf %22, %21 : vector<16x128xf32>
    %24 = math.tanh %23 : vector<16x128xf32>
    %cst_17 = arith.constant 1.000000e+00 : f32
    %25 = vector.broadcast %cst_17 : f32 to vector<16x128xf32>
    %26 = arith.addf %24, %25 : vector<16x128xf32>
    %cst_18 = arith.constant 5.000000e-01 : f32
    %27 = vector.broadcast %cst_18 : f32 to vector<16x128xf32>
    %28 = arith.mulf %27, %26 : vector<16x128xf32>
    %c0_19 = arith.constant 0 : index
    %c0_20 = arith.constant 0 : index
    %29 = vector.load %arg4[%c0_19, %c0_20] : memref<136x128xf32, #tpu.memory_space<vmem>>, vector<128x128xf32>
    %cst_21 = arith.constant dense<0.000000e+00> : vector<16x128xf32>
    %30 = tpu.matmul %28, %29, %cst_21 {dimension_numbers = #tpu.dot_dimension_numbers<[1], [0], [0], [1], [0, 0, 1, 1], [], []>} : vector<16x128xf32>, vector<128x128xf32>, vector<16x128xf32> -> vector<16x128xf32>
    %c128_22 = arith.constant 128 : index
    %c0_23 = arith.constant 0 : index
    %31 = vector.load %arg4[%c128_22, %c0_23] : memref<136x128xf32, #tpu.memory_space<vmem>>, vector<1x128xf32>
    %32 = vector.broadcast %31 : vector<1x128xf32> to vector<16x128xf32>
    %33 = arith.addf %30, %32 : vector<16x128xf32>
    %c0_24 = arith.constant 0 : index
    %c0_25 = arith.constant 0 : index
    %34 = vector.load %arg5[%c0_24, %c0_25] : memref<16x128xf32, #tpu.memory_space<vmem>>, vector<16x128xf32>
    tpu.vector_store %arg5[%c0_24, %c0_25], %33 {strides = array<i32>} : memref<16x128xf32, #tpu.memory_space<vmem>>, vector<16x128xf32>,
    return
  }
  func.func @transform_0(%arg0: i32) -> (i32, i32) {
    %c0_i32 = arith.constant 0 : i32
    %c0_i32_0 = arith.constant 0 : i32
    return %arg0, %c0_i32 : i32, i32
  }
  func.func @transform_1(%arg0: i32) -> (i32, i32) {
    %c0_i32 = arith.constant 0 : i32
    %c0_i32_0 = arith.constant 0 : i32
    %c0_i32_1 = arith.constant 0 : i32
    return %c0_i32, %c0_i32_0 : i32, i32
  }
  func.func @transform_2(%arg0: i32) -> (i32, i32, i32) {
    %c0_i32 = arith.constant 0 : i32
    %c0_i32_0 = arith.constant 0 : i32
    %c0_i32_1 = arith.constant 0 : i32
    %c0_i32_2 = arith.constant 0 : i32
    return %c0_i32, %c0_i32_0, %c0_i32_1 : i32, i32, i32
  }
  func.func @transform_3(%arg0: i32) -> (i32, i32) {
    %c0_i32 = arith.constant 0 : i32
    %c0_i32_0 = arith.constant 0 : i32
    %c0_i32_1 = arith.constant 0 : i32
    return %c0_i32, %c0_i32_0 : i32, i32
  }
  func.func @transform_4(%arg0: i32) -> (i32, i32) {
    %c0_i32 = arith.constant 0 : i32
    %c0_i32_0 = arith.constant 0 : i32
    return %arg0, %c0_i32 : i32, i32
  }
}

</mosaic_0001>

<bundles_post_ra>
// kernel: tpu_custom_call.1
= control target key start
LH: loop header
LB: loop body
LE: loop exit
PB: predicated region body
PF: predicated region fallthrough
CT: control target
= control target key end

     0   :  { %9 = vsyncpa [#allocation3], 0  ;;  %s493_s0 = inlined_call_operand.hbm [shape: f32[16,32], index: 0, kind: input, shape index: {}]   ;;  %s494_s1 = inlined_call_operand.hbm [shape: f32[40,128], index: 1, kind: input, shape index: {}]   ;;  %s495_s2 = inlined_call_operand.hbm [shape: f32[2,136,128], index: 2, kind: input, shape index: {}]   ;;  %s496_s3 = inlined_call_operand.hbm [shape: f32[136,128], index: 3, kind: input, shape index: {}]   ;;  %s497_s4 = inlined_call_operand.hbm [shape: f32[16,128], index: 4, kind: output, shape index: {}]  }
   0x1   :  { %10 = vsyncpa [#allocation6], 0 }
   0x2   :  { %11 = vsyncpa [#allocation9], 0 }
   0x3   :  { %12 = vsyncpa [#allocation4], 0  ;;  %s30_s17 = sshll.u32 %s494_s1, 4  ;;  %s431_s18 = smov [#allocation5]   ;;  %s31_s17 = int_to_ptr.hbm [resolvable:$true] %s30_s17 }
   0x4   :  { %s32_s19 = sshll.u32 %s431_s18, 4  ;;  %s17_s22 = sshll.u32 %s493_s0, 4  ;;  %s33_s19 = int_to_ptr.vmem [resolvable:$true] %s32_s19  ;;  %s18_s22 = int_to_ptr.hbm [resolvable:$true] %s17_s22 }
   0x5   :  { %s432_s23 = smov 128   ;;  %s433_s24 = smov 8  }
   0x6   :  { %38 = dma.hbm_to_vmem [thread:$0]  %s31_s17, 640, %s33_s19, [#allocation6], %s432_s23, %s432_s23, %s433_s24  }
   0x7   :  { %s434_s25 = smov [#allocation2]   ;;  %s43_s1 = sshll.u32 %s495_s2, 4  ;;  %s44_s1 = int_to_ptr.hbm [resolvable:$true] %s43_s1 }
   0x8   :  { %s19_s26 = sshll.u32 %s434_s25, 4  ;;  %s56_s30 = sshll.u32 %s496_s3, 4  ;;  %s20_s26 = int_to_ptr.vmem [resolvable:$true] %s19_s26  ;;  %s57_s30 = int_to_ptr.hbm [resolvable:$true] %s56_s30 }
   0x9   :  { %25 = dma.hbm_to_vmem [thread:$0]  %s18_s22, 256, %s20_s26, [#allocation3], %s432_s23, %s432_s23, %s433_s24  }
   0xa   :  { %s435_s5 = smov [#allocation7]   ;;  %s436_s7 = smov [#allocation8]  }
   0xb   :  { %s45_s6 = sshll.u32 %s435_s5, 4  ;;  %s58_s2 = sshll.u32 %s436_s7, 4  ;;  %s46_s6 = int_to_ptr.vmem [resolvable:$true] %s45_s6  ;;  %s59_s2 = int_to_ptr.vmem [resolvable:$true] %s58_s2 }
   0xc   :  { %51 = dma.hbm_to_vmem [thread:$0]  %s44_s1, 4352, %s46_s6, [#allocation6], %s432_s23, %s432_s23, %s433_s24  }
   0xd   :  { %64 = dma.hbm_to_vmem [thread:$0]  %s57_s30, 2176, %s59_s2, [#allocation9], %s432_s23, %s432_s23, %s433_s24  }
   0xe   :  { %423 = dma.done.wait [#allocation3], 256  }
   0xf   :  { %424 = vsyncadd [#allocation3], 4294967040 }
  0x10   :  { %425 = dma.done.wait [#allocation6], 4992  }
  0x11   :  { %426 = vsyncadd [#allocation6], 4294962304 }
  0x12   :  { %427 = dma.done.wait [#allocation9], 2176  }
  0x13   :  { %428 = vsyncadd [#allocation9], 4294965120  ;;  %v86_v0 = vld [vmem:[#allocation5 + $0x18] sm:$0xff]  ;;  %v85_v1 = vld [vmem:[#allocation5 + $0x10] sm:$0xff]  ;;  %vm89_vm0 = vcmask 261120   ;;  %s437_s3 = smov [#allocation10]  }
  0x14   :  { %108 = vmatpush.msra.mxu0 %v86_v0  ;;  %v84_v2 = vld [vmem:[#allocation5 + $0x8] sm:$0xff]  ;;  %v136_v3 = vld [vmem:[#allocation7 + $0x78] sm:$0xff]  ;;  %v135_v4 = vld [vmem:[#allocation7 + $0x70] sm:$0xff]  ;;  %s261_s8 = sshll.u32 %s437_s3, 4  ;;  %s263_s11 = sshll.u32 %s497_s4, 4  ;;  %s262_s8 = int_to_ptr.vmem [resolvable:$true] %s261_s8  ;;  %s264_s11 = int_to_ptr.hbm [resolvable:$true] %s263_s11 }
  0x15   :  { %139 = vmatpush.msra.mxu1 %v136_v3  ;;  %v83_v5 = vld [vmem:[#allocation5] sm:$0xff]  ;;  %v134_v6 = vld [vmem:[#allocation7 + $0x68] sm:$0xff]  ;;  %v133_v8 = vld [vmem:[#allocation7 + $0x60] sm:$0xff] }
  0x16   :  { %109 = vmatpush.msra.mxu0 %v85_v1  ;;  %v81_v7 = vld [vmem:[#allocation2] sm:$0xff]  ;;  %v132_v9 = vld [vmem:[#allocation7 + $0x58] sm:$0xff]  ;;  %v131_v10 = vld [vmem:[#allocation7 + $0x50] sm:$0xff] }
  0x17   :  { %140 = vmatpush.msra.mxu1 %v135_v4  ;;  %v130_v11 = vld [vmem:[#allocation7 + $0x48] sm:$0xff]  ;;  %v82_v12 = vld [vmem:[#allocation2 + $0x8] sm:$0xff]  ;;  %v129_v13 = vld [vmem:[#allocation7 + $0x40] sm:$0xff] }
  0x18   :  { %110 = vmatpush.msra.mxu0 %v84_v2  ;;  %v128_v14 = vld [vmem:[#allocation7 + $0x38] sm:$0xff]  ;;  %v127_v15 = vld [vmem:[#allocation7 + $0x30] sm:$0xff]  ;;  %v126_v16 = vld [vmem:[#allocation7 + $0x28] sm:$0xff] }
  0x19   :  { %141 = vmatpush.msra.mxu1 %v134_v6  ;;  %v125_v17 = vld [vmem:[#allocation7 + $0x20] sm:$0xff]  ;;  %v124_v18 = vld [vmem:[#allocation7 + $0x18] sm:$0xff]  ;;  %v123_v19 = vld [vmem:[#allocation7 + $0x10] sm:$0xff] }
  0x1a   :  { %111 = vmatpush.msra.mxu0 %v83_v5  ;;  %v122_v20 = vld [vmem:[#allocation7 + $0x8] sm:$0xff]  ;;  %v121_v21 = vld [vmem:[#allocation7] sm:$0xff]  ;;  %v179_v23 = vld [vmem:[#allocation7 + $0xf8] sm:$0xff] }
  0x1b   :  { %278 = vmatmul.msk.f32.vlgmr.msra.gmra.mxu0 %vm89_vm0, %v81_v7  ;;  %142 = vmatpush.msra.mxu1 %v133_v8  ;;  %v180_v22 = vld [vmem:[#allocation7 + $0x100] sm:$0xff]  ;;  %v178_v24 = vld [vmem:[#allocation7 + $0xf0] sm:$0xff]  ;;  %v177_v25 = vld [vmem:[#allocation7 + $0xe8] sm:$0xff] }
  0x1c   :  { %183 = vmatpush.msra.mxu2 %v180_v22  ;;  %v176_v26 = vld [vmem:[#allocation7 + $0xe0] sm:$0xff]  ;;  %v175_v27 = vld [vmem:[#allocation7 + $0xd8] sm:$0xff]  ;;  %v174_v28 = vld [vmem:[#allocation7 + $0xd0] sm:$0xff] }
  0x1d   :  { %143 = vmatpush.msra.mxu1 %v132_v9  ;;  %v287_v29 = vld [vmem:[#allocation5 + $0x20] ss:$0 sm:$0xff]  ;;  %v173_v30 = vld [vmem:[#allocation7 + $0xc8] sm:$0xff]  ;;  %v172_v32 = vld [vmem:[#allocation7 + $0xc0] sm:$0xff] }
  0x1e   :  { %184 = vmatpush.msra.mxu2 %v179_v23  ;;  %v171_v34 = vld [vmem:[#allocation7 + $0xb8] sm:$0xff]  ;;  %v170_v35 = vld [vmem:[#allocation7 + $0xb0] sm:$0xff]  ;;  %v169_v40 = vld [vmem:[#allocation7 + $0xa8] sm:$0xff] }
  0x1f   :  { %144 = vmatpush.msra.mxu1 %v131_v10  ;;  %v168_v41 = vld [vmem:[#allocation7 + $0xa0] sm:$0xff]  ;;  %v167_v42 = vld [vmem:[#allocation7 + $0x98] sm:$0xff]  ;;  %v166_v43 = vld [vmem:[#allocation7 + $0x90] sm:$0xff] }
  0x20   :  { %185 = vmatpush.msra.mxu2 %v178_v24  ;;  %v165_v44 = vld [vmem:[#allocation7 + $0x88] sm:$0xff]  ;;  %v228_v46 = vld [vmem:[#allocation8 + $0x70] sm:$0xff]  ;;  %v227_v47 = vld [vmem:[#allocation8 + $0x68] sm:$0xff] }
  0x21   :  { %145 = vmatpush.msra.mxu1 %v130_v11  ;;  %v229_v45 = vld [vmem:[#allocation8 + $0x78] sm:$0xff]  ;;  %v226_v48 = vld [vmem:[#allocation8 + $0x60] sm:$0xff]  ;;  %v224_v50 = vld [vmem:[#allocation8 + $0x50] sm:$0xff] }
  0x22   :  { %186 = vmatpush.msra.mxu2 %v177_v25  ;;  %232 = vmatpush.msra.mxu3 %v229_v45  ;;  %v225_v49 = vld [vmem:[#allocation8 + $0x58] sm:$0xff]  ;;  %v223_v51 = vld [vmem:[#allocation8 + $0x48] sm:$0xff]  ;;  %v288_v52 = vld [vmem:[#allocation7 + $0x80] ss:$0 sm:$0xff] }
  0x23   :  { %279 = vmatmul.msk.f32.gmra.mxu0 %vm89_vm0, %v82_v12  ;;  %146 = vmatpush.msra.mxu1 %v129_v13  ;;  %v222_v53 = vld [vmem:[#allocation8 + $0x40] sm:$0xff]  ;;  %v221_v60 = vld [vmem:[#allocation8 + $0x38] sm:$0xff]  ;;  %v220_v61 = vld [vmem:[#allocation8 + $0x30] sm:$0xff] }
  0x24   :  { %187 = vmatpush.msra.mxu2 %v176_v26  ;;  %233 = vmatpush.msra.mxu3 %v228_v46  ;;  %v219_v62 = vld [vmem:[#allocation8 + $0x28] sm:$0xff]  ;;  %v218_v63 = vld [vmem:[#allocation8 + $0x20] sm:$0xff]  ;;  %v217_v0 = vld [vmem:[#allocation8 + $0x18] sm:$0xff] }
  0x25   :  { %147 = vmatpush.msra.mxu1 %v128_v14  ;;  %v216_v1 = vld [vmem:[#allocation8 + $0x10] sm:$0xff]  ;;  %v215_v2 = vld [vmem:[#allocation8 + $0x8] sm:$0xff]  ;;  %v214_v3 = vld [vmem:[#allocation8] sm:$0xff] }
  0x26   :  { %188 = vmatpush.msra.mxu2 %v175_v27  ;;  %234 = vmatpush.msra.mxu3 %v227_v47  ;;  %v289_v4 = vld [vmem:[#allocation7 + $0x108] ss:$0 sm:$0xff] }
  0x27   :  { %148 = vmatpush.msra.mxu1 %v127_v15 }
  0x28   :  { %189 = vmatpush.msra.mxu2 %v174_v28  ;;  %235 = vmatpush.msra.mxu3 %v226_v48 }
  0x29   :  { %149 = vmatpush.msra.mxu1 %v126_v16 }
  0x2a   :  { %190 = vmatpush.msra.mxu2 %v173_v30  ;;  %236 = vmatpush.msra.mxu3 %v225_v49 }
  0x2b   :  { %150 = vmatpush.msra.mxu1 %v125_v17  ;;  %v290_v17 = vld [vmem:[#allocation8 + $0x80] ss:$0 sm:$0xff] }
  0x2c   :  { %191 = vmatpush.msra.mxu2 %v172_v32  ;;  %237 = vmatpush.msra.mxu3 %v224_v50 }
  0x2d   :  { %151 = vmatpush.msra.mxu1 %v124_v18 }
  0x2e   :  { %192 = vmatpush.msra.mxu2 %v171_v34  ;;  %238 = vmatpush.msra.mxu3 %v223_v51 }
  0x2f   :  { %152 = vmatpush.msra.mxu1 %v123_v19 }
  0x30   :  { %193 = vmatpush.msra.mxu2 %v170_v35  ;;  %239 = vmatpush.msra.mxu3 %v222_v53 }
  0x31   :  { %153 = vmatpush.msra.mxu1 %v122_v20 }
  0x32   :  { %194 = vmatpush.msra.mxu2 %v169_v40  ;;  %240 = vmatpush.msra.mxu3 %v221_v60 }
  0x33   :  { %154 = vmatpush.msra.mxu1 %v121_v21 }
  0x34   :  { %195 = vmatpush.msra.mxu2 %v168_v41  ;;  %241 = vmatpush.msra.mxu3 %v220_v61 }
  0x36   :  { %196 = vmatpush.msra.mxu2 %v167_v42  ;;  %242 = vmatpush.msra.mxu3 %v219_v62 }
  0x38   :  { %197 = vmatpush.msra.mxu2 %v166_v43  ;;  %243 = vmatpush.msra.mxu3 %v218_v63 }
  0x3a   :  { %198 = vmatpush.msra.mxu2 %v165_v44  ;;  %244 = vmatpush.msra.mxu3 %v217_v0 }
  0x3c   :  { %245 = vmatpush.msra.mxu3 %v216_v1 }
  0x3e   :  { %246 = vmatpush.msra.mxu3 %v215_v2 }
  0x40   :  { %247 = vmatpush.msra.mxu3 %v214_v3 }
  0x98   :  { %v113_v31 = vpop.f32.mrf.mxu0 }
  0x99   :  { %v114_v33 = vadd.f32 %v287_v29, %v113_v31 }
  0x9b   :  { %291 = vtanh.f32 %v114_v33 }
  0xa0   :  { %v116_v36 = vpop.f32.mrf.mxu0 }
  0xa1   :  { %v292_v37 = vpop.eup %291  ;;  %v117_v38 = vadd.f32 %v287_v29, %v116_v36 }
  0xa2   :  { %155 = vmatmul.f32.vlgmr.msra.gmra.mxu1 %v292_v37 }
  0xa3   :  { %293 = vtanh.f32 %v117_v38 }
  0xa9   :  { %v294_v39 = vpop.eup %293 }
  0xaa   :  { %158 = vmatmul.f32.gmra.mxu1 %v294_v39 }
 0x11f   :  { %v156_v54 = vpop.f32.mrf.mxu1 }
 0x120   :  { %v157_v55 = vadd.f32 %v288_v52, %v156_v54 }
 0x122   :  { %295 = vtanh.f32 %v157_v55 }
 0x127   :  { %v159_v56 = vpop.f32.mrf.mxu1 }
 0x128   :  { %v296_v57 = vpop.eup %295  ;;  %v160_v58 = vadd.f32 %v288_v52, %v159_v56 }
 0x129   :  { %199 = vmatmul.f32.vlgmr.msra.gmra.mxu2 %v296_v57 }
 0x12a   :  { %297 = vtanh.f32 %v160_v58 }
 0x130   :  { %v298_v59 = vpop.eup %297 }
 0x131   :  { %202 = vmatmul.f32.gmra.mxu2 %v298_v59 }
 0x1ac   :  { %v200_v5 = vpop.f32.mrf.mxu2 }
 0x1ad   :  { %v201_v6 = vadd.f32 %v289_v4, %v200_v5 }
 0x1af   :  { %v206_v7 = vmul.f32 0.5, %v201_v6 }
 0x1b1   :  { %299 = vtanh.f32 %v206_v7 }
 0x1b4   :  { %v203_v8 = vpop.f32.mrf.mxu2 }
 0x1b5   :  { %v204_v9 = vadd.f32 %v289_v4, %v203_v8 }
 0x1b7   :  { %v300_v10 = vpop.eup %299  ;;  %v207_v11 = vmul.f32 0.5, %v204_v9 }
 0x1b8   :  { %v210_v12 = vadd.f32 1.0, %v300_v10 }
 0x1b9   :  { %301 = vtanh.f32 %v207_v11 }
 0x1ba   :  { %v212_v13 = vmul.f32 0.5, %v210_v12 }
 0x1bc   :  { %248 = vmatmul.f32.vlgmr.msra.gmra.mxu3 %v212_v13 }
 0x1bf   :  { %v302_v14 = vpop.eup %301 }
 0x1c0   :  { %v211_v15 = vadd.f32 1.0, %v302_v14 }
 0x1c2   :  { %v213_v16 = vmul.f32 0.5, %v211_v15 }
 0x1c4   :  { %251 = vmatmul.f32.gmra.mxu3 %v213_v16 }
 0x23f   :  { %v249_v18 = vpop.f32.mrf.mxu3 }
 0x240   :  { %v250_v19 = vadd.f32 %v290_v17, %v249_v18 }
 0x242   :  { %255 = vst [vmem:[#allocation10] sm:$0xff] %v250_v19 }
 0x247   :  { %v252_v20 = vpop.f32.mrf.mxu3 }
 0x248   :  { %v253_v21 = vadd.f32 %v290_v17, %v252_v20 }
 0x24a   :  { %256 = vst [vmem:[#allocation10 + $0x8] sm:$0xff] %v253_v21 }
 0x24b   :  { %269 = dma.vmem_to_hbm [thread:$0]  %s262_s8, 256, %s264_s11, [#allocation4], %s432_s23, %s432_s23, %s433_s24  }
 0x24c   :  { %429 = dma.done.wait [#allocation4], 256  }
 0x24d   :  { %430 = vsyncadd [#allocation4], 4294967040 }
 0x24e   :  { %274 = vsyncpa [#allocation3], 1 }
 0x24f   :  { %275 = vsyncpa [#allocation6], 1 }
 0x250   :  { %276 = vsyncpa [#allocation9], 1 }
 0x251   :  { %277 = vsyncpa [#allocation4], 1 }

</bundles_post_ra>
